<compile_context>
chip_gen: v5e
topology: v5e:2x2
jax: 0.10.0
libtpu: 0.0.40
codegen_flags: <defaults>
</compile_context>

<pallas_src>
import functools

import numpy as np
import jax
import jax.numpy as jnp
from jax import lax
from jax.experimental import pallas as pl
from jax.experimental.pallas import tpu as pltpu


def _round_up(v, m):
    return ((v + m - 1) // m) * m


# ----------------------------------------------------------------------------
# Pallas kernels
# ----------------------------------------------------------------------------
def conve_feature_kernel(p_ref, wc_ref, bc_ref, wf_ref, bf_ref, x_ref):
    """Per batch tile: conv (VPU taps) + ReLU -> fc (bf16 MXU, bn2 folded) -> ReLU.

    p_ref : (KK, Bt, HWp)   f32  im2col patch slabs, kk-major, hw zero-padded
    wc_ref: (C, KK)         f32  bn0-folded conv weights   (SMEM)
    bc_ref: (C,)            f32  bn0-folded conv bias      (SMEM)
    wf_ref: (C, HWp, Dp)    bf16 bn2-folded fc weights, zero rows at hw padding
    bf_ref: (1, Dp)         f32  bn2-folded fc bias
    x_ref : (Bt, Dp)        bf16 hidden features
    """
    KK = p_ref.shape[0]
    C = wf_ref.shape[0]

    h = bf_ref[...]                                            # (1, Dp) f32, broadcasts
    for c in range(C):                                         # static unroll (C small)
        # conv for channel c: sum of KK scalar * (Bt, HWp) slabs on the VPU.
        acc = wc_ref[c, 0] * p_ref[0]
        for kk in range(1, KK):
            acc = acc + wc_ref[c, kk] * p_ref[kk]
        conv_c = jnp.maximum(acc + bc_ref[c], 0.0)             # (Bt, HWp) f32, ReLU
        # fc contribution of channel c: (Bt, HWp) @ (HWp, Dp), bf16 in / f32 acc.
        h = h + jnp.dot(conv_c.astype(jnp.bfloat16), wf_ref[c],
                        preferred_element_type=jnp.float32)    # (Bt, Dp) f32
    x_ref[...] = jnp.maximum(h, 0.0).astype(jnp.bfloat16)      # ReLU (bn2 folded), bf16 out


def conve_score_kernel(x_ref, e2_ref, b_ref, out_ref):
    """scores = sigmoid(X @ E2^T + b); E2 streamed as bf16 row-slabs (tn, Dp)."""
    s = lax.dot_general(x_ref[...], e2_ref[...], (((1,), (1,)), ((), ())),
                        preferred_element_type=jnp.float32)    # (Bp, tn) f32
    out_ref[...] = jax.nn.sigmoid(s + b_ref[...]).astype(jnp.bfloat16)


# ----------------------------------------------------------------------------
# Wrapper (glue in plain JAX: embedding lookup, im2col, BN folding, padding)
# ----------------------------------------------------------------------------
def conve_forward(e1, r, entity_emb, relation_emb, params, *, d1, d2, k, c_out):
    B = e1.shape[0]
    N, D = entity_emb.shape
    eps = 1e-5

    # --- embedding lookup + stack (torch.cat along dim=2 of NCHW) ---
    E1 = entity_emb[e1].reshape(B, d1, d2)
    R = relation_emb[r].reshape(B, d1, d2)
    stacked = jnp.concatenate([E1, R], axis=1)                      # (B, 2*d1, d2)

    # --- geometry / padded sizes (lane-dense hw & hidden dims, sublane batch) ---
    H, W = 2 * d1, d2
    Ho, Wo = H - k + 1, W - k + 1
    KK, HWo = k * k, Ho * Wo
    HWp = _round_up(HWo, 128)
    Dp = _round_up(D, 128)
    Bt = 128 if B > 128 else _round_up(B, 8)                        # batch tile
    Bp = _round_up(B, Bt)

    # --- im2col patches, kk-major: (KK, Bp, HWp); tap order di*k+dj matches OIHW flatten ---
    cols = []
    for di in range(k):
        for dj in range(k):
            cols.append(stacked[:, di:di + Ho, dj:dj + Wo].reshape(B, HWo))
    patches = jnp.stack(cols, axis=0)                               # (KK, B, HWo)
    patches = jnp.pad(patches, ((0, 0), (0, Bp - B), (0, HWp - HWo)))

    # --- fold bn0 (eval mode, 1 channel) into conv weight/bias ---
    bn0_sc = params['bn0_gamma'][0] / jnp.sqrt(params['bn0_var'][0] + eps)
    bn0_sh = params['bn0_beta'][0] - params['bn0_mean'][0] * bn0_sc
    wc = params['conv_w'].reshape(c_out, KK)                        # (C,1,k,k) -> (C, KK)
    wc_f = (bn0_sc * wc).astype(jnp.float32)                        # (C, KK)
    bc_f = (params['conv_b'] + bn0_sh * wc.sum(axis=1)).astype(jnp.float32)   # (C,)

    # --- fold bn2 (eval) + fc bias into fc weights; permute to (C, HWp, Dp) bf16 ---
    bn2_sc = params['bn2_gamma'] / jnp.sqrt(params['bn2_var'] + eps)     # (D,)
    bn2_sh = params['bn2_beta'] - params['bn2_mean'] * bn2_sc            # (D,)
    wf2 = params['fc_w'].T * bn2_sc[None, :]                             # (feat_dim, D)
    wf3 = wf2.reshape(c_out, HWo, D)
    wf3 = jnp.pad(wf3, ((0, 0), (0, HWp - HWo), (0, Dp - D))).astype(jnp.bfloat16)
    bf_f = jnp.pad((params['fc_b'] * bn2_sc + bn2_sh).reshape(1, D),
                   ((0, 0), (0, Dp - D))).astype(jnp.float32)            # (1, Dp)

    # --- kernel 1: batch-tiled, pipelined, bf16 fc weights, bf16 X output ---
    x = pl.pallas_call(
        conve_feature_kernel,
        out_shape=jax.ShapeDtypeStruct((Bp, Dp), jnp.bfloat16),
        grid=(Bp // Bt,),
        in_specs=[
            pl.BlockSpec((KK, Bt, HWp), lambda i: (0, i, 0)),
            pl.BlockSpec(memory_space=pltpu.MemorySpace.SMEM),   # wc (C, KK) scalars
            pl.BlockSpec(memory_space=pltpu.MemorySpace.SMEM),   # bc (C,)    scalars
            pl.BlockSpec((c_out, HWp, Dp), lambda i: (0, 0, 0)),  # resident fc weights
            pl.BlockSpec((1, Dp), lambda i: (0, 0)),
        ],
        out_specs=pl.BlockSpec((Bt, Dp), lambda i: (i, 0)),
        compiler_params=pltpu.CompilerParams(
            dimension_semantics=("parallel",),
            vmem_limit_bytes=48 * 1024 * 1024),
    )(patches, wc_f, bc_f, wf3, bf_f)

    # --- kernel 2: X @ E2^T + b, sigmoid; large entity tiles, bf16 table & output ---
    tn = 2048 if N >= 2048 else _round_up(N, 128)
    Np = _round_up(N, tn)
    e2_p = jnp.pad(entity_emb, ((0, Np - N), (0, Dp - D))).astype(jnp.bfloat16)  # (Np, Dp)
    bias_p = jnp.pad(params['b'].astype(jnp.float32).reshape(1, N),
                     ((0, 0), (0, Np - N)))                                      # (1, Np)

    scores = pl.pallas_call(
        conve_score_kernel,
        out_shape=jax.ShapeDtypeStruct((Bp, Np), jnp.bfloat16),
        grid=(Np // tn,),
        in_specs=[
            pl.BlockSpec((Bp, Dp), lambda j: (0, 0)),    # X resident across entity tiles
            pl.BlockSpec((tn, Dp), lambda j: (j, 0)),    # row-slab of entity table
            pl.BlockSpec((1, tn), lambda j: (0, j)),
        ],
        out_specs=pl.BlockSpec((Bp, tn), lambda j: (0, j)),
        compiler_params=pltpu.CompilerParams(
            dimension_semantics=("parallel",),
            vmem_limit_bytes=48 * 1024 * 1024),
    )(x, e2_p, bias_p)
    # Padded entity columns are sigmoid(0)=0.5 but sliced off here (must be
    # masked instead if a fused top-k is ever added in-kernel).
    return scores[:B, :N]


# ----------------------------------------------------------------------------
# Pure-JAX f32 reference (correctness check only)
# ----------------------------------------------------------------------------
def conve_reference(e1, r, entity_emb, relation_emb, params, *, d1, d2, k, c_out):
    del c_out
    B = e1.shape[0]
    eps = 1e-5
    E1 = entity_emb[e1].reshape(B, 1, d1, d2)
    R = relation_emb[r].reshape(B, 1, d1, d2)
    x = jnp.concatenate([E1, R], axis=2)                            # (B,1,2*d1,d2)
    x = ((x - params['bn0_mean'].reshape(1, -1, 1, 1))
         / jnp.sqrt(params['bn0_var'].reshape(1, -1, 1, 1) + eps)
         * params['bn0_gamma'].reshape(1, -1, 1, 1)
         + params['bn0_beta'].reshape(1, -1, 1, 1))
    X = lax.conv_general_dilated(x, params['conv_w'], (1, 1), 'VALID',
                                 dimension_numbers=('NCHW', 'OIHW', 'NCHW'))
    X = jax.nn.relu(X + params['conv_b'].reshape(1, -1, 1, 1))
    X = X.reshape(B, -1)
    X = X @ params['fc_w'].T + params['fc_b']
    X = ((X - params['bn2_mean']) / jnp.sqrt(params['bn2_var'] + eps)
         * params['bn2_gamma'] + params['bn2_beta'])
    X = jax.nn.relu(X)
    return jax.nn.sigmoid(X @ entity_emb.T + params['b'])


# ----------------------------------------------------------------------------
# Main
# ----------------------------------------------------------------------------
if __name__ == "__main__":
    # Small but structurally faithful config (entity_dim = d1*d2).
    B = 2
    d1, d2 = 8, 8
    entity_dim = d1 * d2            # 64
    k = 3                           # kernel_size
    c_out = 4                       # num_out_channels
    num_entities = 256
    num_relations = 16
    h_out, w_out = 2 * d1 - k + 1, d2 - k + 1
    feat_dim = c_out * h_out * w_out

    key = jax.random.PRNGKey(0)
    ks = jax.random.split(key, 13)
    entity_emb = 0.1 * jax.random.normal(ks[0], (num_entities, entity_dim), jnp.float32)
    relation_emb = 0.1 * jax.random.normal(ks[1], (num_relations, entity_dim), jnp.float32)

    params = {
        'conv_w': 0.1 * jax.random.normal(ks[2], (c_out, 1, k, k), jnp.float32),
        'conv_b': 0.1 * jax.random.normal(ks[3], (c_out,), jnp.float32),
        'fc_w': 0.05 * jax.random.normal(ks[4], (entity_dim, feat_dim), jnp.float32),
        'fc_b': 0.1 * jax.random.normal(ks[5], (entity_dim,), jnp.float32),
        # Non-trivial BatchNorm running stats (eval mode) so the BN folding is
        # actually validated by the check (not just identity BN).
        'bn0_gamma': jnp.array([1.3], jnp.float32),
        'bn0_beta': jnp.array([0.1], jnp.float32),
        'bn0_mean': jnp.array([0.05], jnp.float32),
        'bn0_var': jnp.array([0.7], jnp.float32),
        'bn2_gamma': 1.0 + 0.2 * jax.random.normal(ks[8], (entity_dim,), jnp.float32),
        'bn2_beta': 0.1 * jax.random.normal(ks[9], (entity_dim,), jnp.float32),
        'bn2_mean': 0.05 * jax.random.normal(ks[10], (entity_dim,), jnp.float32),
        'bn2_var': jax.random.uniform(ks[11], (entity_dim,), jnp.float32, 0.5, 1.5),
        # self.b parameter (small random so the bias path is exercised).
        'b': 0.05 * jax.random.normal(ks[12], (num_entities,), jnp.float32),
    }

    e1 = jax.random.randint(ks[6], (B,), 0, num_entities)
    r = jax.random.randint(ks[7], (B,), 0, num_relations)

    fwd = jax.jit(functools.partial(conve_forward, d1=d1, d2=d2, k=k, c_out=c_out))
    scores = jax.block_until_ready(fwd(e1, r, entity_emb, relation_emb, params))

    ref = conve_reference(e1, r, entity_emb, relation_emb, params,
                          d1=d1, d2=d2, k=k, c_out=c_out)
    # Looser tolerance than pure f32: X / fc weights / entity table / scores are bf16.
    np.testing.assert_allclose(np.asarray(scores.astype(jnp.float32)),
                               np.asarray(ref), rtol=2e-2, atol=8e-3)
    assert scores.shape == (B, num_entities)
    print("KERNEL_OK")
</pallas_src>

<mosaic_0001>
module attributes {stable_mosaic.version = 11 : i64} {
  func.func @conve_feature_kernel(%arg0: i32, %arg1: memref<9x8x128xf32, #tpu.memory_space<vmem>>, %arg2: memref<4x9xf32, #tpu.memory_space<smem>>, %arg3: memref<4xf32, #tpu.memory_space<smem>>, %arg4: memref<4x128x128xbf16, #tpu.memory_space<vmem>>, %arg5: memref<1x128xf32, #tpu.memory_space<vmem>>, %arg6: memref<8x128xbf16, #tpu.memory_space<vmem>>) attributes {dimension_semantics = [#tpu.dimension_semantics<parallel>], iteration_bounds = array<i64: 1>, scalar_prefetch = 0 : i64, scratch_operands = 0 : i64, tpu.core_type = #tpu.core_type<tc>, window_params = [{transform_indices = @transform_0, window_bounds = array<i64: 9, 8, 128>}, {transform_indices = @transform_1, window_bounds = array<i64: 4, 9>}, {transform_indices = @transform_2, window_bounds = array<i64: 4>}, {pipeline_mode = #tpu.pipeline_mode<synchronous>, transform_indices = @transform_3, window_bounds = array<i64: 4, 128, 128>}, {pipeline_mode = #tpu.pipeline_mode<synchronous>, transform_indices = @transform_4, window_bounds = array<i64: 1, 128>}, {transform_indices = @transform_5, window_bounds = array<i64: 8, 128>}]} {
    %c0 = arith.constant 0 : index
    %c0_0 = arith.constant 0 : index
    %0 = vector.load %arg5[%c0, %c0_0] : memref<1x128xf32, #tpu.memory_space<vmem>>, vector<1x128xf32>
    %c0_1 = arith.constant 0 : index
    %c0_2 = arith.constant 0 : index
    %1 = memref.load %arg2[%c0_1, %c0_2] : memref<4x9xf32, #tpu.memory_space<smem>>
    %c0_3 = arith.constant 0 : index
    %c0_4 = arith.constant 0 : index
    %c0_5 = arith.constant 0 : index
    %2 = vector.load %arg1[%c0_3, %c0_4, %c0_5] : memref<9x8x128xf32, #tpu.memory_space<vmem>>, vector<1x8x128xf32>
    %3 = vector.shape_cast %2 : vector<1x8x128xf32> to vector<8x128xf32>
    %4 = vector.broadcast %1 : f32 to vector<8x128xf32>
    %5 = arith.mulf %4, %3 : vector<8x128xf32>
    %c0_6 = arith.constant 0 : index
    %c1 = arith.constant 1 : index
    %6 = memref.load %arg2[%c0_6, %c1] : memref<4x9xf32, #tpu.memory_space<smem>>
    %c1_7 = arith.constant 1 : index
    %c0_8 = arith.constant 0 : index
    %c0_9 = arith.constant 0 : index
    %7 = vector.load %arg1[%c1_7, %c0_8, %c0_9] : memref<9x8x128xf32, #tpu.memory_space<vmem>>, vector<1x8x128xf32>
    %8 = vector.shape_cast %7 : vector<1x8x128xf32> to vector<8x128xf32>
    %9 = vector.broadcast %6 : f32 to vector<8x128xf32>
    %10 = arith.mulf %9, %8 : vector<8x128xf32>
    %11 = arith.addf %5, %10 : vector<8x128xf32>
    %c0_10 = arith.constant 0 : index
    %c2 = arith.constant 2 : index
    %12 = memref.load %arg2[%c0_10, %c2] : memref<4x9xf32, #tpu.memory_space<smem>>
    %c2_11 = arith.constant 2 : index
    %c0_12 = arith.constant 0 : index
    %c0_13 = arith.constant 0 : index
    %13 = vector.load %arg1[%c2_11, %c0_12, %c0_13] : memref<9x8x128xf32, #tpu.memory_space<vmem>>, vector<1x8x128xf32>
    %14 = vector.shape_cast %13 : vector<1x8x128xf32> to vector<8x128xf32>
    %15 = vector.broadcast %12 : f32 to vector<8x128xf32>
    %16 = arith.mulf %15, %14 : vector<8x128xf32>
    %17 = arith.addf %11, %16 : vector<8x128xf32>
    %c0_14 = arith.constant 0 : index
    %c3 = arith.constant 3 : index
    %18 = memref.load %arg2[%c0_14, %c3] : memref<4x9xf32, #tpu.memory_space<smem>>
    %c3_15 = arith.constant 3 : index
    %c0_16 = arith.constant 0 : index
    %c0_17 = arith.constant 0 : index
    %19 = vector.load %arg1[%c3_15, %c0_16, %c0_17] : memref<9x8x128xf32, #tpu.memory_space<vmem>>, vector<1x8x128xf32>
    %20 = vector.shape_cast %19 : vector<1x8x128xf32> to vector<8x128xf32>
    %21 = vector.broadcast %18 : f32 to vector<8x128xf32>
    %22 = arith.mulf %21, %20 : vector<8x128xf32>
    %23 = arith.addf %17, %22 : vector<8x128xf32>
    %c0_18 = arith.constant 0 : index
    %c4 = arith.constant 4 : index
    %24 = memref.load %arg2[%c0_18, %c4] : memref<4x9xf32, #tpu.memory_space<smem>>
    %c4_19 = arith.constant 4 : index
    %c0_20 = arith.constant 0 : index
    %c0_21 = arith.constant 0 : index
    %25 = vector.load %arg1[%c4_19, %c0_20, %c0_21] : memref<9x8x128xf32, #tpu.memory_space<vmem>>, vector<1x8x128xf32>
    %26 = vector.shape_cast %25 : vector<1x8x128xf32> to vector<8x128xf32>
    %27 = vector.broadcast %24 : f32 to vector<8x128xf32>
    %28 = arith.mulf %27, %26 : vector<8x128xf32>
    %29 = arith.addf %23, %28 : vector<8x128xf32>
    %c0_22 = arith.constant 0 : index
    %c5 = arith.constant 5 : index
    %30 = memref.load %arg2[%c0_22, %c5] : memref<4x9xf32, #tpu.memory_space<smem>>
    %c5_23 = arith.constant 5 : index
    %c0_24 = arith.constant 0 : index
    %c0_25 = arith.constant 0 : index
    %31 = vector.load %arg1[%c5_23, %c0_24, %c0_25] : memref<9x8x128xf32, #tpu.memory_space<vmem>>, vector<1x8x128xf32>
    %32 = vector.shape_cast %31 : vector<1x8x128xf32> to vector<8x128xf32>
    %33 = vector.broadcast %30 : f32 to vector<8x128xf32>
    %34 = arith.mulf %33, %32 : vector<8x128xf32>
    %35 = arith.addf %29, %34 : vector<8x128xf32>
    %c0_26 = arith.constant 0 : index
    %c6 = arith.constant 6 : index
    %36 = memref.load %arg2[%c0_26, %c6] : memref<4x9xf32, #tpu.memory_space<smem>>
    %c6_27 = arith.constant 6 : index
    %c0_28 = arith.constant 0 : index
    %c0_29 = arith.constant 0 : index
    %37 = vector.load %arg1[%c6_27, %c0_28, %c0_29] : memref<9x8x128xf32, #tpu.memory_space<vmem>>, vector<1x8x128xf32>
    %38 = vector.shape_cast %37 : vector<1x8x128xf32> to vector<8x128xf32>
    %39 = vector.broadcast %36 : f32 to vector<8x128xf32>
    %40 = arith.mulf %39, %38 : vector<8x128xf32>
    %41 = arith.addf %35, %40 : vector<8x128xf32>
    %c0_30 = arith.constant 0 : index
    %c7 = arith.constant 7 : index
    %42 = memref.load %arg2[%c0_30, %c7] : memref<4x9xf32, #tpu.memory_space<smem>>
    %c7_31 = arith.constant 7 : index
    %c0_32 = arith.constant 0 : index
    %c0_33 = arith.constant 0 : index
    %43 = vector.load %arg1[%c7_31, %c0_32, %c0_33] : memref<9x8x128xf32, #tpu.memory_space<vmem>>, vector<1x8x128xf32>
    %44 = vector.shape_cast %43 : vector<1x8x128xf32> to vector<8x128xf32>
    %45 = vector.broadcast %42 : f32 to vector<8x128xf32>
    %46 = arith.mulf %45, %44 : vector<8x128xf32>
    %47 = arith.addf %41, %46 : vector<8x128xf32>
    %c0_34 = arith.constant 0 : index
    %c8 = arith.constant 8 : index
    %48 = memref.load %arg2[%c0_34, %c8] : memref<4x9xf32, #tpu.memory_space<smem>>
    %c8_35 = arith.constant 8 : index
    %c0_36 = arith.constant 0 : index
    %c0_37 = arith.constant 0 : index
    %49 = vector.load %arg1[%c8_35, %c0_36, %c0_37] : memref<9x8x128xf32, #tpu.memory_space<vmem>>, vector<1x8x128xf32>
    %50 = vector.shape_cast %49 : vector<1x8x128xf32> to vector<8x128xf32>
    %51 = vector.broadcast %48 : f32 to vector<8x128xf32>
    %52 = arith.mulf %51, %50 : vector<8x128xf32>
    %53 = arith.addf %47, %52 : vector<8x128xf32>
    %c0_38 = arith.constant 0 : index
    %54 = memref.load %arg3[%c0_38] : memref<4xf32, #tpu.memory_space<smem>>
    %55 = vector.broadcast %54 : f32 to vector<8x128xf32>
    %56 = arith.addf %53, %55 : vector<8x128xf32>
    %cst = arith.constant 0.000000e+00 : f32
    %57 = vector.broadcast %cst : f32 to vector<8x128xf32>
    %58 = arith.maximumf %56, %57 : vector<8x128xf32>
    %59 = arith.truncf %58 : vector<8x128xf32> to vector<8x128xbf16>
    %c0_39 = arith.constant 0 : index
    %c0_40 = arith.constant 0 : index
    %c0_41 = arith.constant 0 : index
    %60 = vector.load %arg4[%c0_39, %c0_40, %c0_41] : memref<4x128x128xbf16, #tpu.memory_space<vmem>>, vector<1x128x128xbf16>
    %61 = vector.shape_cast %60 : vector<1x128x128xbf16> to vector<128x128xbf16>
    %cst_42 = arith.constant dense<0.000000e+00> : vector<8x128xf32>
    %62 = tpu.matmul %59, %61, %cst_42 {dimension_numbers = #tpu.dot_dimension_numbers<[1], [0], [0], [1], [0, 0, 1, 1], [], []>} : vector<8x128xbf16>, vector<128x128xbf16>, vector<8x128xf32> -> vector<8x128xf32>
    %63 = vector.broadcast %0 : vector<1x128xf32> to vector<8x128xf32>
    %64 = arith.addf %63, %62 : vector<8x128xf32>
    %c1_43 = arith.constant 1 : index
    %c0_44 = arith.constant 0 : index
    %65 = memref.load %arg2[%c1_43, %c0_44] : memref<4x9xf32, #tpu.memory_space<smem>>
    %c0_45 = arith.constant 0 : index
    %c0_46 = arith.constant 0 : index
    %c0_47 = arith.constant 0 : index
    %66 = vector.load %arg1[%c0_45, %c0_46, %c0_47] : memref<9x8x128xf32, #tpu.memory_space<vmem>>, vector<1x8x128xf32>
    %67 = vector.shape_cast %66 : vector<1x8x128xf32> to vector<8x128xf32>
    %68 = vector.broadcast %65 : f32 to vector<8x128xf32>
    %69 = arith.mulf %68, %67 : vector<8x128xf32>
    %c1_48 = arith.constant 1 : index
    %c1_49 = arith.constant 1 : index
    %70 = memref.load %arg2[%c1_48, %c1_49] : memref<4x9xf32, #tpu.memory_space<smem>>
    %c1_50 = arith.constant 1 : index
    %c0_51 = arith.constant 0 : index
    %c0_52 = arith.constant 0 : index
    %71 = vector.load %arg1[%c1_50, %c0_51, %c0_52] : memref<9x8x128xf32, #tpu.memory_space<vmem>>, vector<1x8x128xf32>
    %72 = vector.shape_cast %71 : vector<1x8x128xf32> to vector<8x128xf32>
    %73 = vector.broadcast %70 : f32 to vector<8x128xf32>
    %74 = arith.mulf %73, %72 : vector<8x128xf32>
    %75 = arith.addf %69, %74 : vector<8x128xf32>
    %c1_53 = arith.constant 1 : index
    %c2_54 = arith.constant 2 : index
    %76 = memref.load %arg2[%c1_53, %c2_54] : memref<4x9xf32, #tpu.memory_space<smem>>
    %c2_55 = arith.constant 2 : index
    %c0_56 = arith.constant 0 : index
    %c0_57 = arith.constant 0 : index
    %77 = vector.load %arg1[%c2_55, %c0_56, %c0_57] : memref<9x8x128xf32, #tpu.memory_space<vmem>>, vector<1x8x128xf32>
    %78 = vector.shape_cast %77 : vector<1x8x128xf32> to vector<8x128xf32>
    %79 = vector.broadcast %76 : f32 to vector<8x128xf32>
    %80 = arith.mulf %79, %78 : vector<8x128xf32>
    %81 = arith.addf %75, %80 : vector<8x128xf32>
    %c1_58 = arith.constant 1 : index
    %c3_59 = arith.constant 3 : index
    %82 = memref.load %arg2[%c1_58, %c3_59] : memref<4x9xf32, #tpu.memory_space<smem>>
    %c3_60 = arith.constant 3 : index
    %c0_61 = arith.constant 0 : index
    %c0_62 = arith.constant 0 : index
    %83 = vector.load %arg1[%c3_60, %c0_61, %c0_62] : memref<9x8x128xf32, #tpu.memory_space<vmem>>, vector<1x8x128xf32>
    %84 = vector.shape_cast %83 : vector<1x8x128xf32> to vector<8x128xf32>
    %85 = vector.broadcast %82 : f32 to vector<8x128xf32>
    %86 = arith.mulf %85, %84 : vector<8x128xf32>
    %87 = arith.addf %81, %86 : vector<8x128xf32>
    %c1_63 = arith.constant 1 : index
    %c4_64 = arith.constant 4 : index
    %88 = memref.load %arg2[%c1_63, %c4_64] : memref<4x9xf32, #tpu.memory_space<smem>>
    %c4_65 = arith.constant 4 : index
    %c0_66 = arith.constant 0 : index
    %c0_67 = arith.constant 0 : index
    %89 = vector.load %arg1[%c4_65, %c0_66, %c0_67] : memref<9x8x128xf32, #tpu.memory_space<vmem>>, vector<1x8x128xf32>
    %90 = vector.shape_cast %89 : vector<1x8x128xf32> to vector<8x128xf32>
    %91 = vector.broadcast %88 : f32 to vector<8x128xf32>
    %92 = arith.mulf %91, %90 : vector<8x128xf32>
    %93 = arith.addf %87, %92 : vector<8x128xf32>
    %c1_68 = arith.constant 1 : index
    %c5_69 = arith.constant 5 : index
    %94 = memref.load %arg2[%c1_68, %c5_69] : memref<4x9xf32, #tpu.memory_space<smem>>
    %c5_70 = arith.constant 5 : index
    %c0_71 = arith.constant 0 : index
    %c0_72 = arith.constant 0 : index
    %95 = vector.load %arg1[%c5_70, %c0_71, %c0_72] : memref<9x8x128xf32, #tpu.memory_space<vmem>>, vector<1x8x128xf32>
    %96 = vector.shape_cast %95 : vector<1x8x128xf32> to vector<8x128xf32>
    %97 = vector.broadcast %94 : f32 to vector<8x128xf32>
    %98 = arith.mulf %97, %96 : vector<8x128xf32>
    %99 = arith.addf %93, %98 : vector<8x128xf32>
    %c1_73 = arith.constant 1 : index
    %c6_74 = arith.constant 6 : index
    %100 = memref.load %arg2[%c1_73, %c6_74] : memref<4x9xf32, #tpu.memory_space<smem>>
    %c6_75 = arith.constant 6 : index
    %c0_76 = arith.constant 0 : index
    %c0_77 = arith.constant 0 : index
    %101 = vector.load %arg1[%c6_75, %c0_76, %c0_77] : memref<9x8x128xf32, #tpu.memory_space<vmem>>, vector<1x8x128xf32>
    %102 = vector.shape_cast %101 : vector<1x8x128xf32> to vector<8x128xf32>
    %103 = vector.broadcast %100 : f32 to vector<8x128xf32>
    %104 = arith.mulf %103, %102 : vector<8x128xf32>
    %105 = arith.addf %99, %104 : vector<8x128xf32>
    %c1_78 = arith.constant 1 : index
    %c7_79 = arith.constant 7 : index
    %106 = memref.load %arg2[%c1_78, %c7_79] : memref<4x9xf32, #tpu.memory_space<smem>>
    %c7_80 = arith.constant 7 : index
    %c0_81 = arith.constant 0 : index
    %c0_82 = arith.constant 0 : index
    %107 = vector.load %arg1[%c7_80, %c0_81, %c0_82] : memref<9x8x128xf32, #tpu.memory_space<vmem>>, vector<1x8x128xf32>
    %108 = vector.shape_cast %107 : vector<1x8x128xf32> to vector<8x128xf32>
    %109 = vector.broadcast %106 : f32 to vector<8x128xf32>
    %110 = arith.mulf %109, %108 : vector<8x128xf32>
    %111 = arith.addf %105, %110 : vector<8x128xf32>
    %c1_83 = arith.constant 1 : index
    %c8_84 = arith.constant 8 : index
    %112 = memref.load %arg2[%c1_83, %c8_84] : memref<4x9xf32, #tpu.memory_space<smem>>
    %c8_85 = arith.constant 8 : index
    %c0_86 = arith.constant 0 : index
    %c0_87 = arith.constant 0 : index
    %113 = vector.load %arg1[%c8_85, %c0_86, %c0_87] : memref<9x8x128xf32, #tpu.memory_space<vmem>>, vector<1x8x128xf32>
    %114 = vector.shape_cast %113 : vector<1x8x128xf32> to vector<8x128xf32>
    %115 = vector.broadcast %112 : f32 to vector<8x128xf32>
    %116 = arith.mulf %115, %114 : vector<8x128xf32>
    %117 = arith.addf %111, %116 : vector<8x128xf32>
    %c1_88 = arith.constant 1 : index
    %118 = memref.load %arg3[%c1_88] : memref<4xf32, #tpu.memory_space<smem>>
    %119 = vector.broadcast %118 : f32 to vector<8x128xf32>
    %120 = arith.addf %117, %119 : vector<8x128xf32>
    %cst_89 = arith.constant 0.000000e+00 : f32
    %121 = vector.broadcast %cst_89 : f32 to vector<8x128xf32>
    %122 = arith.maximumf %120, %121 : vector<8x128xf32>
    %123 = arith.truncf %122 : vector<8x128xf32> to vector<8x128xbf16>
    %c1_90 = arith.constant 1 : index
    %c0_91 = arith.constant 0 : index
    %c0_92 = arith.constant 0 : index
    %124 = vector.load %arg4[%c1_90, %c0_91, %c0_92] : memref<4x128x128xbf16, #tpu.memory_space<vmem>>, vector<1x128x128xbf16>
    %125 = vector.shape_cast %124 : vector<1x128x128xbf16> to vector<128x128xbf16>
    %cst_93 = arith.constant dense<0.000000e+00> : vector<8x128xf32>
    %126 = tpu.matmul %123, %125, %cst_93 {dimension_numbers = #tpu.dot_dimension_numbers<[1], [0], [0], [1], [0, 0, 1, 1], [], []>} : vector<8x128xbf16>, vector<128x128xbf16>, vector<8x128xf32> -> vector<8x128xf32>
    %127 = arith.addf %64, %126 : vector<8x128xf32>
    %c2_94 = arith.constant 2 : index
    %c0_95 = arith.constant 0 : index
    %128 = memref.load %arg2[%c2_94, %c0_95] : memref<4x9xf32, #tpu.memory_space<smem>>
    %c0_96 = arith.constant 0 : index
    %c0_97 = arith.constant 0 : index
    %c0_98 = arith.constant 0 : index
    %129 = vector.load %arg1[%c0_96, %c0_97, %c0_98] : memref<9x8x128xf32, #tpu.memory_space<vmem>>, vector<1x8x128xf32>
    %130 = vector.shape_cast %129 : vector<1x8x128xf32> to vector<8x128xf32>
    %131 = vector.broadcast %128 : f32 to vector<8x128xf32>
    %132 = arith.mulf %131, %130 : vector<8x128xf32>
    %c2_99 = arith.constant 2 : index
    %c1_100 = arith.constant 1 : index
    %133 = memref.load %arg2[%c2_99, %c1_100] : memref<4x9xf32, #tpu.memory_space<smem>>
    %c1_101 = arith.constant 1 : index
    %c0_102 = arith.constant 0 : index
    %c0_103 = arith.constant 0 : index
    %134 = vector.load %arg1[%c1_101, %c0_102, %c0_103] : memref<9x8x128xf32, #tpu.memory_space<vmem>>, vector<1x8x128xf32>
    %135 = vector.shape_cast %134 : vector<1x8x128xf32> to vector<8x128xf32>
    %136 = vector.broadcast %133 : f32 to vector<8x128xf32>
    %137 = arith.mulf %136, %135 : vector<8x128xf32>
    %138 = arith.addf %132, %137 : vector<8x128xf32>
    %c2_104 = arith.constant 2 : index
    %c2_105 = arith.constant 2 : index
    %139 = memref.load %arg2[%c2_104, %c2_105] : memref<4x9xf32, #tpu.memory_space<smem>>
    %c2_106 = arith.constant 2 : index
    %c0_107 = arith.constant 0 : index
    %c0_108 = arith.constant 0 : index
    %140 = vector.load %arg1[%c2_106, %c0_107, %c0_108] : memref<9x8x128xf32, #tpu.memory_space<vmem>>, vector<1x8x128xf32>
    %141 = vector.shape_cast %140 : vector<1x8x128xf32> to vector<8x128xf32>
    %142 = vector.broadcast %139 : f32 to vector<8x128xf32>
    %143 = arith.mulf %142, %141 : vector<8x128xf32>
    %144 = arith.addf %138, %143 : vector<8x128xf32>
    %c2_109 = arith.constant 2 : index
    %c3_110 = arith.constant 3 : index
    %145 = memref.load %arg2[%c2_109, %c3_110] : memref<4x9xf32, #tpu.memory_space<smem>>
    %c3_111 = arith.constant 3 : index
    %c0_112 = arith.constant 0 : index
    %c0_113 = arith.constant 0 : index
    %146 = vector.load %arg1[%c3_111, %c0_112, %c0_113] : memref<9x8x128xf32, #tpu.memory_space<vmem>>, vector<1x8x128xf32>
    %147 = vector.shape_cast %146 : vector<1x8x128xf32> to vector<8x128xf32>
    %148 = vector.broadcast %145 : f32 to vector<8x128xf32>
    %149 = arith.mulf %148, %147 : vector<8x128xf32>
    %150 = arith.addf %144, %149 : vector<8x128xf32>
    %c2_114 = arith.constant 2 : index
    %c4_115 = arith.constant 4 : index
    %151 = memref.load %arg2[%c2_114, %c4_115] : memref<4x9xf32, #tpu.memory_space<smem>>
    %c4_116 = arith.constant 4 : index
    %c0_117 = arith.constant 0 : index
    %c0_118 = arith.constant 0 : index
    %152 = vector.load %arg1[%c4_116, %c0_117, %c0_118] : memref<9x8x128xf32, #tpu.memory_space<vmem>>, vector<1x8x128xf32>
    %153 = vector.shape_cast %152 : vector<1x8x128xf32> to vector<8x128xf32>
    %154 = vector.broadcast %151 : f32 to vector<8x128xf32>
    %155 = arith.mulf %154, %153 : vector<8x128xf32>
    %156 = arith.addf %150, %155 : vector<8x128xf32>
    %c2_119 = arith.constant 2 : index
    %c5_120 = arith.constant 5 : index
    %157 = memref.load %arg2[%c2_119, %c5_120] : memref<4x9xf32, #tpu.memory_space<smem>>
    %c5_121 = arith.constant 5 : index
    %c0_122 = arith.constant 0 : index
    %c0_123 = arith.constant 0 : index
    %158 = vector.load %arg1[%c5_121, %c0_122, %c0_123] : memref<9x8x128xf32, #tpu.memory_space<vmem>>, vector<1x8x128xf32>
    %159 = vector.shape_cast %158 : vector<1x8x128xf32> to vector<8x128xf32>
    %160 = vector.broadcast %157 : f32 to vector<8x128xf32>
    %161 = arith.mulf %160, %159 : vector<8x128xf32>
    %162 = arith.addf %156, %161 : vector<8x128xf32>
    %c2_124 = arith.constant 2 : index
    %c6_125 = arith.constant 6 : index
    %163 = memref.load %arg2[%c2_124, %c6_125] : memref<4x9xf32, #tpu.memory_space<smem>>
    %c6_126 = arith.constant 6 : index
    %c0_127 = arith.constant 0 : index
    %c0_128 = arith.constant 0 : index
    %164 = vector.load %arg1[%c6_126, %c0_127, %c0_128] : memref<9x8x128xf32, #tpu.memory_space<vmem>>, vector<1x8x128xf32>
    %165 = vector.shape_cast %164 : vector<1x8x128xf32> to vector<8x128xf32>
    %166 = vector.broadcast %163 : f32 to vector<8x128xf32>
    %167 = arith.mulf %166, %165 : vector<8x128xf32>
    %168 = arith.addf %162, %167 : vector<8x128xf32>
    %c2_129 = arith.constant 2 : index
    %c7_130 = arith.constant 7 : index
    %169 = memref.load %arg2[%c2_129, %c7_130] : memref<4x9xf32, #tpu.memory_space<smem>>
    %c7_131 = arith.constant 7 : index
    %c0_132 = arith.constant 0 : index
    %c0_133 = arith.constant 0 : index
    %170 = vector.load %arg1[%c7_131, %c0_132, %c0_133] : memref<9x8x128xf32, #tpu.memory_space<vmem>>, vector<1x8x128xf32>
    %171 = vector.shape_cast %170 : vector<1x8x128xf32> to vector<8x128xf32>
    %172 = vector.broadcast %169 : f32 to vector<8x128xf32>
    %173 = arith.mulf %172, %171 : vector<8x128xf32>
    %174 = arith.addf %168, %173 : vector<8x128xf32>
    %c2_134 = arith.constant 2 : index
    %c8_135 = arith.constant 8 : index
    %175 = memref.load %arg2[%c2_134, %c8_135] : memref<4x9xf32, #tpu.memory_space<smem>>
    %c8_136 = arith.constant 8 : index
    %c0_137 = arith.constant 0 : index
    %c0_138 = arith.constant 0 : index
    %176 = vector.load %arg1[%c8_136, %c0_137, %c0_138] : memref<9x8x128xf32, #tpu.memory_space<vmem>>, vector<1x8x128xf32>
    %177 = vector.shape_cast %176 : vector<1x8x128xf32> to vector<8x128xf32>
    %178 = vector.broadcast %175 : f32 to vector<8x128xf32>
    %179 = arith.mulf %178, %177 : vector<8x128xf32>
    %180 = arith.addf %174, %179 : vector<8x128xf32>
    %c2_139 = arith.constant 2 : index
    %181 = memref.load %arg3[%c2_139] : memref<4xf32, #tpu.memory_space<smem>>
    %182 = vector.broadcast %181 : f32 to vector<8x128xf32>
    %183 = arith.addf %180, %182 : vector<8x128xf32>
    %cst_140 = arith.constant 0.000000e+00 : f32
    %184 = vector.broadcast %cst_140 : f32 to vector<8x128xf32>
    %185 = arith.maximumf %183, %184 : vector<8x128xf32>
    %186 = arith.truncf %185 : vector<8x128xf32> to vector<8x128xbf16>
    %c2_141 = arith.constant 2 : index
    %c0_142 = arith.constant 0 : index
    %c0_143 = arith.constant 0 : index
    %187 = vector.load %arg4[%c2_141, %c0_142, %c0_143] : memref<4x128x128xbf16, #tpu.memory_space<vmem>>, vector<1x128x128xbf16>
    %188 = vector.shape_cast %187 : vector<1x128x128xbf16> to vector<128x128xbf16>
    %cst_144 = arith.constant dense<0.000000e+00> : vector<8x128xf32>
    %189 = tpu.matmul %186, %188, %cst_144 {dimension_numbers = #tpu.dot_dimension_numbers<[1], [0], [0], [1], [0, 0, 1, 1], [], []>} : vector<8x128xbf16>, vector<128x128xbf16>, vector<8x128xf32> -> vector<8x128xf32>
    %190 = arith.addf %127, %189 : vector<8x128xf32>
    %c3_145 = arith.constant 3 : index
    %c0_146 = arith.constant 0 : index
    %191 = memref.load %arg2[%c3_145, %c0_146] : memref<4x9xf32, #tpu.memory_space<smem>>
    %c0_147 = arith.constant 0 : index
    %c0_148 = arith.constant 0 : index
    %c0_149 = arith.constant 0 : index
    %192 = vector.load %arg1[%c0_147, %c0_148, %c0_149] : memref<9x8x128xf32, #tpu.memory_space<vmem>>, vector<1x8x128xf32>
    %193 = vector.shape_cast %192 : vector<1x8x128xf32> to vector<8x128xf32>
    %194 = vector.broadcast %191 : f32 to vector<8x128xf32>
    %195 = arith.mulf %194, %193 : vector<8x128xf32>
    %c3_150 = arith.constant 3 : index
    %c1_151 = arith.constant 1 : index
    %196 = memref.load %arg2[%c3_150, %c1_151] : memref<4x9xf32, #tpu.memory_space<smem>>
    %c1_152 = arith.constant 1 : index
    %c0_153 = arith.constant 0 : index
    %c0_154 = arith.constant 0 : index
    %197 = vector.load %arg1[%c1_152, %c0_153, %c0_154] : memref<9x8x128xf32, #tpu.memory_space<vmem>>, vector<1x8x128xf32>
    %198 = vector.shape_cast %197 : vector<1x8x128xf32> to vector<8x128xf32>
    %199 = vector.broadcast %196 : f32 to vector<8x128xf32>
    %200 = arith.mulf %199, %198 : vector<8x128xf32>
    %201 = arith.addf %195, %200 : vector<8x128xf32>
    %c3_155 = arith.constant 3 : index
    %c2_156 = arith.constant 2 : index
    %202 = memref.load %arg2[%c3_155, %c2_156] : memref<4x9xf32, #tpu.memory_space<smem>>
    %c2_157 = arith.constant 2 : index
    %c0_158 = arith.constant 0 : index
    %c0_159 = arith.constant 0 : index
    %203 = vector.load %arg1[%c2_157, %c0_158, %c0_159] : memref<9x8x128xf32, #tpu.memory_space<vmem>>, vector<1x8x128xf32>
    %204 = vector.shape_cast %203 : vector<1x8x128xf32> to vector<8x128xf32>
    %205 = vector.broadcast %202 : f32 to vector<8x128xf32>
    %206 = arith.mulf %205, %204 : vector<8x128xf32>
    %207 = arith.addf %201, %206 : vector<8x128xf32>
    %c3_160 = arith.constant 3 : index
    %c3_161 = arith.constant 3 : index
    %208 = memref.load %arg2[%c3_160, %c3_161] : memref<4x9xf32, #tpu.memory_space<smem>>
    %c3_162 = arith.constant 3 : index
    %c0_163 = arith.constant 0 : index
    %c0_164 = arith.constant 0 : index
    %209 = vector.load %arg1[%c3_162, %c0_163, %c0_164] : memref<9x8x128xf32, #tpu.memory_space<vmem>>, vector<1x8x128xf32>
    %210 = vector.shape_cast %209 : vector<1x8x128xf32> to vector<8x128xf32>
    %211 = vector.broadcast %208 : f32 to vector<8x128xf32>
    %212 = arith.mulf %211, %210 : vector<8x128xf32>
    %213 = arith.addf %207, %212 : vector<8x128xf32>
    %c3_165 = arith.constant 3 : index
    %c4_166 = arith.constant 4 : index
    %214 = memref.load %arg2[%c3_165, %c4_166] : memref<4x9xf32, #tpu.memory_space<smem>>
    %c4_167 = arith.constant 4 : index
    %c0_168 = arith.constant 0 : index
    %c0_169 = arith.constant 0 : index
    %215 = vector.load %arg1[%c4_167, %c0_168, %c0_169] : memref<9x8x128xf32, #tpu.memory_space<vmem>>, vector<1x8x128xf32>
    %216 = vector.shape_cast %215 : vector<1x8x128xf32> to vector<8x128xf32>
    %217 = vector.broadcast %214 : f32 to vector<8x128xf32>
    %218 = arith.mulf %217, %216 : vector<8x128xf32>
    %219 = arith.addf %213, %218 : vector<8x128xf32>
    %c3_170 = arith.constant 3 : index
    %c5_171 = arith.constant 5 : index
    %220 = memref.load %arg2[%c3_170, %c5_171] : memref<4x9xf32, #tpu.memory_space<smem>>
    %c5_172 = arith.constant 5 : index
    %c0_173 = arith.constant 0 : index
    %c0_174 = arith.constant 0 : index
    %221 = vector.load %arg1[%c5_172, %c0_173, %c0_174] : memref<9x8x128xf32, #tpu.memory_space<vmem>>, vector<1x8x128xf32>
    %222 = vector.shape_cast %221 : vector<1x8x128xf32> to vector<8x128xf32>
    %223 = vector.broadcast %220 : f32 to vector<8x128xf32>
    %224 = arith.mulf %223, %222 : vector<8x128xf32>
    %225 = arith.addf %219, %224 : vector<8x128xf32>
    %c3_175 = arith.constant 3 : index
    %c6_176 = arith.constant 6 : index
    %226 = memref.load %arg2[%c3_175, %c6_176] : memref<4x9xf32, #tpu.memory_space<smem>>
    %c6_177 = arith.constant 6 : index
    %c0_178 = arith.constant 0 : index
    %c0_179 = arith.constant 0 : index
    %227 = vector.load %arg1[%c6_177, %c0_178, %c0_179] : memref<9x8x128xf32, #tpu.memory_space<vmem>>, vector<1x8x128xf32>
    %228 = vector.shape_cast %227 : vector<1x8x128xf32> to vector<8x128xf32>
    %229 = vector.broadcast %226 : f32 to vector<8x128xf32>
    %230 = arith.mulf %229, %228 : vector<8x128xf32>
    %231 = arith.addf %225, %230 : vector<8x128xf32>
    %c3_180 = arith.constant 3 : index
    %c7_181 = arith.constant 7 : index
    %232 = memref.load %arg2[%c3_180, %c7_181] : memref<4x9xf32, #tpu.memory_space<smem>>
    %c7_182 = arith.constant 7 : index
    %c0_183 = arith.constant 0 : index
    %c0_184 = arith.constant 0 : index
    %233 = vector.load %arg1[%c7_182, %c0_183, %c0_184] : memref<9x8x128xf32, #tpu.memory_space<vmem>>, vector<1x8x128xf32>
    %234 = vector.shape_cast %233 : vector<1x8x128xf32> to vector<8x128xf32>
    %235 = vector.broadcast %232 : f32 to vector<8x128xf32>
    %236 = arith.mulf %235, %234 : vector<8x128xf32>
    %237 = arith.addf %231, %236 : vector<8x128xf32>
    %c3_185 = arith.constant 3 : index
    %c8_186 = arith.constant 8 : index
    %238 = memref.load %arg2[%c3_185, %c8_186] : memref<4x9xf32, #tpu.memory_space<smem>>
    %c8_187 = arith.constant 8 : index
    %c0_188 = arith.constant 0 : index
    %c0_189 = arith.constant 0 : index
    %239 = vector.load %arg1[%c8_187, %c0_188, %c0_189] : memref<9x8x128xf32, #tpu.memory_space<vmem>>, vector<1x8x128xf32>
    %240 = vector.shape_cast %239 : vector<1x8x128xf32> to vector<8x128xf32>
    %241 = vector.broadcast %238 : f32 to vector<8x128xf32>
    %242 = arith.mulf %241, %240 : vector<8x128xf32>
    %243 = arith.addf %237, %242 : vector<8x128xf32>
    %c3_190 = arith.constant 3 : index
    %244 = memref.load %arg3[%c3_190] : memref<4xf32, #tpu.memory_space<smem>>
    %245 = vector.broadcast %244 : f32 to vector<8x128xf32>
    %246 = arith.addf %243, %245 : vector<8x128xf32>
    %cst_191 = arith.constant 0.000000e+00 : f32
    %247 = vector.broadcast %cst_191 : f32 to vector<8x128xf32>
    %248 = arith.maximumf %246, %247 : vector<8x128xf32>
    %249 = arith.truncf %248 : vector<8x128xf32> to vector<8x128xbf16>
    %c3_192 = arith.constant 3 : index
    %c0_193 = arith.constant 0 : index
    %c0_194 = arith.constant 0 : index
    %250 = vector.load %arg4[%c3_192, %c0_193, %c0_194] : memref<4x128x128xbf16, #tpu.memory_space<vmem>>, vector<1x128x128xbf16>
    %251 = vector.shape_cast %250 : vector<1x128x128xbf16> to vector<128x128xbf16>
    %cst_195 = arith.constant dense<0.000000e+00> : vector<8x128xf32>
    %252 = tpu.matmul %249, %251, %cst_195 {dimension_numbers = #tpu.dot_dimension_numbers<[1], [0], [0], [1], [0, 0, 1, 1], [], []>} : vector<8x128xbf16>, vector<128x128xbf16>, vector<8x128xf32> -> vector<8x128xf32>
    %253 = arith.addf %190, %252 : vector<8x128xf32>
    %cst_196 = arith.constant 0.000000e+00 : f32
    %254 = vector.broadcast %cst_196 : f32 to vector<8x128xf32>
    %255 = arith.maximumf %253, %254 : vector<8x128xf32>
    %256 = arith.truncf %255 : vector<8x128xf32> to vector<8x128xbf16>
    %c0_197 = arith.constant 0 : index
    %c0_198 = arith.constant 0 : index
    %257 = vector.load %arg6[%c0_197, %c0_198] : memref<8x128xbf16, #tpu.memory_space<vmem>>, vector<8x128xbf16>
    tpu.vector_store %arg6[%c0_197, %c0_198], %256 {strides = array<i32>} : memref<8x128xbf16, #tpu.memory_space<vmem>>, vector<8x128xbf16>,
    return
  }
  func.func @transform_0(%arg0: i32) -> (i32, i32, i32) {
    %c0_i32 = arith.constant 0 : i32
    %c0_i32_0 = arith.constant 0 : i32
    %c0_i32_1 = arith.constant 0 : i32
    return %c0_i32, %arg0, %c0_i32_0 : i32, i32, i32
  }
  func.func @transform_1(%arg0: i32) -> (i32, i32) {
    %c0_i32 = arith.constant 0 : i32
    %c0_i32_0 = arith.constant 0 : i32
    %c0_i32_1 = arith.constant 0 : i32
    return %c0_i32, %c0_i32_0 : i32, i32
  }
  func.func @transform_2(%arg0: i32) -> i32 {
    %c0_i32 = arith.constant 0 : i32
    %c0_i32_0 = arith.constant 0 : i32
    return %c0_i32 : i32
  }
  func.func @transform_3(%arg0: i32) -> (i32, i32, i32) {
    %c0_i32 = arith.constant 0 : i32
    %c0_i32_0 = arith.constant 0 : i32
    %c0_i32_1 = arith.constant 0 : i32
    %c0_i32_2 = arith.constant 0 : i32
    return %c0_i32, %c0_i32_0, %c0_i32_1 : i32, i32, i32
  }
  func.func @transform_4(%arg0: i32) -> (i32, i32) {
    %c0_i32 = arith.constant 0 : i32
    %c0_i32_0 = arith.constant 0 : i32
    %c0_i32_1 = arith.constant 0 : i32
    return %c0_i32, %c0_i32_0 : i32, i32
  }
  func.func @transform_5(%arg0: i32) -> (i32, i32) {
    %c0_i32 = arith.constant 0 : i32
    %c0_i32_0 = arith.constant 0 : i32
    return %arg0, %c0_i32 : i32, i32
  }
}

module attributes {stable_mosaic.version = 11 : i64} {
  func.func @conve_score_kernel(%arg0: i32, %arg1: memref<8x128xbf16, #tpu.memory_space<vmem>>, %arg2: memref<256x128xbf16, #tpu.memory_space<vmem>>, %arg3: memref<1x256xf32, #tpu.memory_space<vmem>>, %arg4: memref<8x256xbf16, #tpu.memory_space<vmem>>) attributes {dimension_semantics = [#tpu.dimension_semantics<parallel>], iteration_bounds = array<i64: 1>, scalar_prefetch = 0 : i64, scratch_operands = 0 : i64, tpu.core_type = #tpu.core_type<tc>, window_params = [{pipeline_mode = #tpu.pipeline_mode<synchronous>, transform_indices = @transform_0, window_bounds = array<i64: 8, 128>}, {transform_indices = @transform_1, window_bounds = array<i64: 256, 128>}, {transform_indices = @transform_2, window_bounds = array<i64: 1, 256>}, {transform_indices = @transform_3, window_bounds = array<i64: 8, 256>}]} {
    %c0 = arith.constant 0 : index
    %c0_0 = arith.constant 0 : index
    %0 = vector.load %arg1[%c0, %c0_0] : memref<8x128xbf16, #tpu.memory_space<vmem>>, vector<8x128xbf16>
    %c0_1 = arith.constant 0 : index
    %c0_2 = arith.constant 0 : index
    %1 = vector.load %arg2[%c0_1, %c0_2] : memref<256x128xbf16, #tpu.memory_space<vmem>>, vector<256x128xbf16>
    %cst = arith.constant dense<0.000000e+00> : vector<8x256xf32>
    %2 = tpu.matmul %0, %1, %cst {dimension_numbers = #tpu.dot_dimension_numbers<[1], [1], [0], [0], [0, 0, 1, 0], [], []>} : vector<8x128xbf16>, vector<256x128xbf16>, vector<8x256xf32> -> vector<8x256xf32>
    %c0_3 = arith.constant 0 : index
    %c0_4 = arith.constant 0 : index
    %3 = vector.load %arg3[%c0_3, %c0_4] : memref<1x256xf32, #tpu.memory_space<vmem>>, vector<1x256xf32>
    %4 = vector.broadcast %3 : vector<1x256xf32> to vector<8x256xf32>
    %5 = arith.addf %2, %4 : vector<8x256xf32>
    %6 = arith.negf %5 : vector<8x256xf32>
    %7 = math.exp %6 : vector<8x256xf32>
    %cst_5 = arith.constant 1.000000e+00 : f32
    %8 = vector.broadcast %cst_5 : f32 to vector<8x256xf32>
    %9 = arith.addf %8, %7 : vector<8x256xf32>
    %10 = arith.divf %8, %9 : vector<8x256xf32>
    %11 = arith.truncf %10 : vector<8x256xf32> to vector<8x256xbf16>
    %c0_6 = arith.constant 0 : index
    %c0_7 = arith.constant 0 : index
    %12 = vector.load %arg4[%c0_6, %c0_7] : memref<8x256xbf16, #tpu.memory_space<vmem>>, vector<8x256xbf16>
    tpu.vector_store %arg4[%c0_6, %c0_7], %11 {strides = array<i32>} : memref<8x256xbf16, #tpu.memory_space<vmem>>, vector<8x256xbf16>,
    return
  }
  func.func @transform_0(%arg0: i32) -> (i32, i32) {
    %c0_i32 = arith.constant 0 : i32
    %c0_i32_0 = arith.constant 0 : i32
    %c0_i32_1 = arith.constant 0 : i32
    return %c0_i32, %c0_i32_0 : i32, i32
  }
  func.func @transform_1(%arg0: i32) -> (i32, i32) {
    %c0_i32 = arith.constant 0 : i32
    %c0_i32_0 = arith.constant 0 : i32
    return %arg0, %c0_i32 : i32, i32
  }
  func.func @transform_2(%arg0: i32) -> (i32, i32) {
    %c0_i32 = arith.constant 0 : i32
    %c0_i32_0 = arith.constant 0 : i32
    return %c0_i32, %arg0 : i32, i32
  }
  func.func @transform_3(%arg0: i32) -> (i32, i32) {
    %c0_i32 = arith.constant 0 : i32
    %c0_i32_0 = arith.constant 0 : i32
    return %c0_i32, %arg0 : i32, i32
  }
}

</mosaic_0001>

<bundles_post_ra>
// kernel: conve_forward.3
= control target key start
LH: loop header
LB: loop body
LE: loop exit
PB: predicated region body
PF: predicated region fallthrough
CT: control target
= control target key end

     0   :  { %s386_s1 = inlined_call_operand.vmem [shape: bf16[256,128], index: 1, kind: input, shape index: {}]   ;;  %s387_s0 = inlined_call_operand.vmem [shape: bf16[8,128], index: 0, kind: input, shape index: {}]   ;;  %s388_s2 = inlined_call_operand.vmem [shape: f32[1,256], index: 2, kind: input, shape index: {}]   ;;  %s389_s3 = inlined_call_operand.vmem [shape: bf16[8,256], index: 3, kind: output, shape index: {}]  }
   0x1   :  { %v292_v0 = vld [vmem:[%s386_s1 + $0x38] sm:$0xff]  ;;  %v291_v2 = vld [vmem:[%s386_s1 + $0x30] sm:$0xff]  ;;  %v290_v4 = vld [vmem:[%s386_s1 + $0x28] sm:$0xff] }
   0x2   :  { %v300_v1 = vld [vmem:[%s386_s1 + $0x78] sm:$0xff]  ;;  %149 = vmatpush.bf16.xpose.msra.mxu0 %v292_v0  ;;  %v299_v3 = vld [vmem:[%s386_s1 + $0x70] sm:$0xff]  ;;  %v298_v5 = vld [vmem:[%s386_s1 + $0x68] sm:$0xff] }
   0x3   :  { %162 = vmatpush.bf16.xpose.msra.mxu1 %v300_v1  ;;  %v289_v6 = vld [vmem:[%s386_s1 + $0x20] sm:$0xff]  ;;  %v288_v8 = vld [vmem:[%s386_s1 + $0x18] sm:$0xff]  ;;  %v287_v10 = vld [vmem:[%s386_s1 + $0x10] sm:$0xff] }
   0x4   :  { %v297_v7 = vld [vmem:[%s386_s1 + $0x60] sm:$0xff]  ;;  %v296_v9 = vld [vmem:[%s386_s1 + $0x58] sm:$0xff]  ;;  %v295_v11 = vld [vmem:[%s386_s1 + $0x50] sm:$0xff] }
   0x5   :  { %v286_v12 = vld [vmem:[%s386_s1 + $0x8] sm:$0xff]  ;;  %v285_v14 = vld [vmem:[%s386_s1] sm:$0xff] }
   0x6   :  { %v294_v13 = vld [vmem:[%s386_s1 + $0x48] sm:$0xff]  ;;  %v293_v15 = vld [vmem:[%s386_s1 + $0x40] sm:$0xff] }
   0x7   :  { %v14_v16 = vld [vmem:[%s387_s0] sm:$0xf] }
   0x8   :  { %v47_v17 = vld [vmem:[%s388_s2] sm:$0x3] }
   0x9   :  { %v49_v18 = vperm.slane %v47_v17, 0  ;;  %v50_v19 = vperm.slane %v47_v17, 1 }
   0xa   :  { %150 = vmatpush.bf16.xpose.msra.mxu0 %v291_v2 }
   0xb   :  { %163 = vmatpush.bf16.xpose.msra.mxu1 %v299_v3 }
  0x12   :  { %151 = vmatpush.bf16.xpose.msra.mxu0 %v290_v4 }
  0x13   :  { %164 = vmatpush.bf16.xpose.msra.mxu1 %v298_v5 }
  0x1a   :  { %152 = vmatpush.bf16.xpose.msra.mxu0 %v289_v6 }
  0x1b   :  { %165 = vmatpush.bf16.xpose.msra.mxu1 %v297_v7 }
  0x22   :  { %153 = vmatpush.bf16.xpose.msra.mxu0 %v288_v8 }
  0x23   :  { %166 = vmatpush.bf16.xpose.msra.mxu1 %v296_v9 }
  0x2a   :  { %154 = vmatpush.bf16.xpose.msra.mxu0 %v287_v10 }
  0x2b   :  { %167 = vmatpush.bf16.xpose.msra.mxu1 %v295_v11 }
  0x32   :  { %155 = vmatpush.bf16.xpose.msra.mxu0 %v286_v12 }
  0x33   :  { %168 = vmatpush.bf16.xpose.msra.mxu1 %v294_v13 }
  0x3a   :  { %156 = vmatpush.bf16.xpose.msra.mxu0 %v285_v14 }
  0x3b   :  { %169 = vmatpush.bf16.xpose.msra.mxu1 %v293_v15 }
  0x41   :  { %157 = vmatmul.bf16.vlgmr.msra.gmra.mxu0 %v14_v16 }
  0x42   :  { %170 = vmatmul.bf16.vlgmr.msra.gmra.mxu1 %v14_v16 }
  0xbe   :  { %v158_v20 = vpop.f32.mrf.mxu0 }
  0xbf   :  { %v171_v21 = vpop.f32.mrf.mxu1  ;;  %v159_v22 = vadd.f32 %v158_v20, %v49_v18 }
  0xc0   :  { %v172_v23 = vadd.f32 %v171_v21, %v50_v19 }
  0xc1   :  { %v283_v24 = vmul.f32 -1.442695, %v159_v22 }
  0xc2   :  { %v284_v25 = vmul.f32 -1.442695, %v172_v23 }
  0xc3   :  { %301 = vpow2.f32 %v283_v24 }
  0xc4   :  { %303 = vpow2.f32 %v284_v25 }
  0xc6   :  { %v160_v26 = vpop.f32.mrf.mxu0 }
  0xc7   :  { %v173_v27 = vpop.f32.mrf.mxu1 }
  0xc9   :  { %v302_v28 = vpop.eup %301 }
  0xca   :  { %v304_v29 = vpop.eup %303  ;;  %v181_v30 = vadd.f32 1.0, %v302_v28 }
  0xcb   :  { %v182_v31 = vadd.f32 1.0, %v304_v29 }
  0xcc   :  { %305 = vrcp.f32 %v181_v30  ;;  %v194_v37 = vand.u32 2147483648, %v181_v30  ;;  %v192_v40 = vand.u32 2147483647, %v181_v30  ;;  %vm188_vm2 = vweird.f32 %v181_v30 }
  0xcd   :  { %307 = vrcp.f32 %v182_v31  ;;  %v209_v41 = vand.u32 2147483648, %v182_v31  ;;  %v207_v43 = vand.u32 2147483647, %v182_v31  ;;  %vm203_vm4 = vweird.f32 %v182_v31 }
  0xce   :  { %v195_v45 = vor.u32 1.1754944e-38, %v194_v37  ;;  %vm193_vm5 = vcmp.eq.f32.partialorder %v192_v40, 8.507059e+37 }
  0xcf   :  { %v210_v48 = vor.u32 1.1754944e-38, %v209_v41  ;;  %vm208_vm7 = vcmp.eq.f32.partialorder %v207_v43, 8.507059e+37 }
  0xd2   :  { %v306_v32 = vpop.eup %305 }
  0xd3   :  { %v308_v33 = vpop.eup %307  ;;  %v184_v34 = vmul.f32 %v306_v32, %v181_v30  ;;  %vm189_vm0 = vweird.f32 %v306_v32 }
  0xd4   :  { %v199_v35 = vmul.f32 %v308_v33, %v182_v31  ;;  %vm204_vm1 = vweird.f32 %v308_v33  ;;  %vm190_vm3 = vmor %vm188_vm2, %vm189_vm0 }
  0xd5   :  { %v185_v36 = vsub.f32 1.0, %v184_v34  ;;  %vm205_vm6 = vmor %vm203_vm4, %vm204_vm1 }
  0xd6   :  { %v200_v38 = vsub.f32 1.0, %v199_v35 }
  0xd7   :  { %v186_v39 = vmul.f32 %v306_v32, %v185_v36 }
  0xd8   :  { %v201_v42 = vmul.f32 %v308_v33, %v200_v38 }
  0xd9   :  { %v187_v44 = vadd.f32 %v306_v32, %v186_v39 }
  0xda   :  { %v202_v46 = vadd.f32 %v308_v33, %v201_v42 }
  0xdb   :  { %v191_v47 = vsel %vm190_vm3, %v306_v32, %v187_v44 }
  0xdc   :  { %v196_v49 = vsel %vm193_vm5, %v195_v45, %v191_v47  ;;  %v206_v50 = vsel %vm205_vm6, %v308_v33, %v202_v46 }
  0xdd   :  { %v211_v51 = vsel %vm208_vm7, %v210_v48, %v206_v50 }
  0xde   :  { %v213_v52 = vpack.c.bf16 %v211_v51, %v196_v49 }
  0xe0   :  { %214 = vst [vmem:[%s389_s3] sm:$0xff] %v213_v52 }

// kernel: conve_forward.2
= control target key start
LH: loop header
LB: loop body
LE: loop exit
PB: predicated region body
PF: predicated region fallthrough
CT: control target
= control target key end

     0   :  { %10 = vsyncpa [#allocation3], 0  ;;  %s1155_s0 = inlined_call_operand.vmem [shape: f32[9,8,128], index: 0, kind: input, shape index: {}]   ;;  %s1156_s1 = inlined_call_operand.vmem [shape: f32[4,9], index: 1, kind: input, shape index: {}]   ;;  %s1157_s2 = inlined_call_operand.vmem [shape: f32[4], index: 2, kind: input, shape index: {}]   ;;  %s1158_s3 = inlined_call_operand.vmem [shape: bf16[4,128,128], index: 3, kind: input, shape index: {}]   ;;  %s1159_s4 = inlined_call_operand.vmem [shape: f32[1,128], index: 4, kind: input, shape index: {}]   ;;  %s1160_s5 = inlined_call_operand.vmem [shape: bf16[8,128], index: 5, kind: output, shape index: {}]  }
   0x1   :  { %s19_s20 = sshll.u32 %s1156_s1, 4  ;;  %s20_s20 = int_to_ptr.vmem [resolvable:$true] %s19_s20 }
   0x2   :  { %11 = vsyncpa [#allocation5], 0  ;;  %s28_s23 = sshll.u32 %s1157_s2, 4  ;;  %s835_s24 = smov [#allocation2]   ;;  %s29_s23 = int_to_ptr.vmem [resolvable:$true] %s28_s23 }
   0x3   :  { %22 = dma.vmem_to_smem %s20_s20, 64, %s835_s24, [#allocation3]  }
   0x4   :  { %s836_s25 = smov [#allocation4]  }
   0x5   :  { %31 = dma.vmem_to_smem %s29_s23, 16, %s836_s25, [#allocation5]  }
   0x6   :  { %831 = dma.done.wait [#allocation3], 64  }
   0x7   :  { %832 = vsyncadd [#allocation3], 4294967232 }
   0x8   :  { %833 = dma.done.wait [#allocation5], 16  }
   0x9   :  { %834 = vsyncadd [#allocation5], 4294967280 }
   0xa   :  { %44 = sfence }
   0xb   :  { %v779_v0 = vld [vmem:[%s1158_s3 + $0x38] sm:$0xff]  ;;  %s882_s30 = sld [smem:[#allocation2]]  ;;  %v778_v4 = vld [vmem:[%s1158_s3 + $0x30] sm:$0xff]  ;;  %v777_v8 = vld [vmem:[%s1158_s3 + $0x28] sm:$0xff] }
   0xc   :  { %v787_v1 = vld [vmem:[%s1158_s3 + $0x78] sm:$0xff]  ;;  %s887_s8 = sld [smem:[#allocation2 + $0x1]]  ;;  %167 = vmatpush.bf16.msra.mxu0 %v779_v0  ;;  %v786_v5 = vld [vmem:[%s1158_s3 + $0x70] sm:$0xff]  ;;  %v785_v9 = vld [vmem:[%s1158_s3 + $0x68] sm:$0xff] }
   0xd   :  { %v795_v2 = vld [vmem:[%s1158_s3 + $0xb8] sm:$0xff]  ;;  %289 = vmatpush.bf16.msra.mxu1 %v787_v1  ;;  %s895_s13 = sld [smem:[#allocation2 + $0x2]]  ;;  %v794_v6 = vld [vmem:[%s1158_s3 + $0xb0] sm:$0xff]  ;;  %v793_v10 = vld [vmem:[%s1158_s3 + $0xa8] sm:$0xff] }
   0xe   :  { %v803_v3 = vld [vmem:[%s1158_s3 + $0xf8] sm:$0xff]  ;;  %408 = vmatpush.bf16.msra.mxu2 %v795_v2  ;;  %v802_v7 = vld [vmem:[%s1158_s3 + $0xf0] sm:$0xff]  ;;  %s903_s18 = sld [smem:[#allocation2 + $0x3]]  ;;  %v801_v11 = vld [vmem:[%s1158_s3 + $0xe8] sm:$0xff] }
   0xf   :  { %527 = vmatpush.bf16.msra.mxu3 %v803_v3  ;;  %s905_s19 = sld [smem:[#allocation2 + $0x4]]  ;;  %v776_v13 = vld [vmem:[%s1158_s3 + $0x20] sm:$0xff]  ;;  %v955_v21 = vld [vmem:[%s1155_s0 + $0x8] sm:$0xff]  ;;  %v960_v22 = vld [vmem:[%s1155_s0 + $0x10] sm:$0xff] }
  0x10   :  { %s907_s20 = sld [smem:[#allocation2 + $0x5]]  ;;  %168 = vmatpush.bf16.msra.mxu0 %v778_v4  ;;  %v784_v14 = vld [vmem:[%s1158_s3 + $0x60] sm:$0xff]  ;;  %v965_v23 = vld [vmem:[%s1155_s0 + $0x18] sm:$0xff]  ;;  %v992_v33 = vld [vmem:[%s1155_s0 + $0x28] sm:$0xff] }
  0x11   :  { %290 = vmatpush.bf16.msra.mxu1 %v786_v5  ;;  %s915_s25 = sld [smem:[#allocation2 + $0x6]]  ;;  %v48_v12 = vstv %s882_s30  ;;  %v792_v17 = vld [vmem:[%s1158_s3 + $0xa0] sm:$0xff]  ;;  %v775_v29 = vld [vmem:[%s1158_s3 + $0x18] sm:$0xff]  ;;  %v1009_v39 = vld [vmem:[%s1155_s0 + $0x30] sm:$0xff] }
  0x12   :  { %409 = vmatpush.bf16.msra.mxu2 %v794_v6  ;;  %s923_s29 = sld [smem:[#allocation2 + $0x7]]  ;;  %v53_v15 = vstv %s887_s8  ;;  %v800_v18 = vld [vmem:[%s1158_s3 + $0xe0] sm:$0xff]  ;;  %v783_v30 = vld [vmem:[%s1158_s3 + $0x58] sm:$0xff]  ;;  %v774_v42 = vld [vmem:[%s1158_s3 + $0x10] sm:$0xff] }
  0x13   :  { %528 = vmatpush.bf16.msra.mxu3 %v802_v7  ;;  %s926_s2 = sld [smem:[#allocation2 + $0x8]]  ;;  %v59_v16 = vstv %s895_s13  ;;  %v947_v19 = vld [vmem:[%s1155_s0] sm:$0xff]  ;;  %v54_v25 = vmul.f32 %v955_v21, %v53_v15  ;;  %v791_v35 = vld [vmem:[%s1158_s3 + $0x98] sm:$0xff]  ;;  %v782_v46 = vld [vmem:[%s1158_s3 + $0x50] sm:$0xff] }
  0x14   :  { %s936_s11 = sld [smem:[#allocation4]]  ;;  %169 = vmatpush.bf16.msra.mxu0 %v777_v8  ;;  %v49_v20 = vmul.f32 %v48_v12, %v947_v19  ;;  %v65_v24 = vstv %s903_s18  ;;  %v60_v26 = vmul.f32 %v960_v22, %v59_v16  ;;  %v977_v27 = vld [vmem:[%s1155_s0 + $0x20] sm:$0xff]  ;;  %v799_v36 = vld [vmem:[%s1158_s3 + $0xd8] sm:$0xff]  ;;  %v790_v52 = vld [vmem:[%s1158_s3 + $0x90] sm:$0xff] }
  0x15   :  { %291 = vmatpush.bf16.msra.mxu1 %v785_v9  ;;  %s949_s8 = sld [smem:[#allocation2 + $0x80]]  ;;  %v71_v28 = vstv %s905_s19  ;;  %v66_v32 = vmul.f32 %v965_v23, %v65_v24  ;;  %v1029_v48 = vld [vmem:[%s1155_s0 + $0x38] sm:$0xff]  ;;  %v798_v53 = vld [vmem:[%s1158_s3 + $0xd0] sm:$0xff]  ;;  %v1051_v59 = vld [vmem:[%s1155_s0 + $0x40] sm:$0xff] }
  0x16   :  { %410 = vmatpush.bf16.msra.mxu2 %v793_v10  ;;  %s968_s27 = sld [smem:[#allocation2 + $0x81]]  ;;  %v55_v31 = vadd.f32 %v54_v25, %v49_v20  ;;  %v77_v34 = vstv %s907_s20  ;;  %v72_v38 = vmul.f32 %v977_v27, %v71_v28  ;;  %v773_v1 = vld [vmem:[%s1158_s3 + $0x8] sm:$0xff]  ;;  %v772_v15 = vld [vmem:[%s1158_s3] sm:$0xff] }
  0x17   :  { %529 = vmatpush.bf16.msra.mxu3 %v801_v11  ;;  %s972_s1 = sld [smem:[#allocation2 + $0x82]]  ;;  %v83_v40 = vstv %s915_s25  ;;  %v78_v43 = vmul.f32 %v992_v33, %v77_v34  ;;  %v781_v2 = vld [vmem:[%s1158_s3 + $0x48] sm:$0xff]  ;;  %v780_v16 = vld [vmem:[%s1158_s3 + $0x40] sm:$0xff] }
  0x18   :  { %s980_s7 = sld [smem:[#allocation2 + $0x83]]  ;;  %170 = vmatpush.bf16.msra.mxu0 %v776_v13  ;;  %v61_v37 = vadd.f32 %v60_v26, %v55_v31  ;;  %v89_v49 = vstv %s923_s29  ;;  %v84_v54 = vmul.f32 %v1009_v39, %v83_v40  ;;  %v789_v7 = vld [vmem:[%s1158_s3 + $0x88] sm:$0xff]  ;;  %v788_v25 = vld [vmem:[%s1158_s3 + $0x80] sm:$0xff] }
  0x19   :  { %292 = vmatpush.bf16.msra.mxu1 %v784_v14  ;;  %s995_s19 = sld [smem:[#allocation2 + $0x84]]  ;;  %v95_v55 = vstv %s926_s2  ;;  %v90_v63 = vmul.f32 %v1029_v48, %v89_v49  ;;  %v797_v8 = vld [vmem:[%s1158_s3 + $0xc8] sm:$0xff]  ;;  %v796_v26 = vld [vmem:[%s1158_s3 + $0xc0] sm:$0xff] }
  0x1a   :  { %411 = vmatpush.bf16.msra.mxu2 %v792_v17  ;;  %s1003_s21 = sld [smem:[#allocation2 + $0x85]]  ;;  %v67_v47 = vadd.f32 %v66_v32, %v61_v37  ;;  %v96_v9 = vmul.f32 %v1051_v59, %v95_v55  ;;  %v99_v28 = vstv %s936_s11 }
  0x1b   :  { %530 = vmatpush.bf16.msra.mxu3 %v800_v18  ;;  %v185_v41 = vstv %s949_s8  ;;  %s1013_s23 = sld [smem:[#allocation2 + $0x86]] }
  0x1c   :  { %v186_v44 = vmul.f32 %v185_v41, %v947_v19  ;;  %v188_v45 = vstv %s968_s27  ;;  %s1021_s28 = sld [smem:[#allocation2 + $0x87]]  ;;  %171 = vmatpush.bf16.msra.mxu0 %v775_v29  ;;  %v73_v58 = vadd.f32 %v72_v38, %v67_v47 }
  0x1d   :  { %293 = vmatpush.bf16.msra.mxu1 %v783_v30  ;;  %v189_v50 = vmul.f32 %v955_v21, %v188_v45  ;;  %v192_v51 = vstv %s972_s1  ;;  %s1034_s27 = sld [smem:[#allocation2 + $0x88]] }
  0x1e   :  { %412 = vmatpush.bf16.msra.mxu2 %v791_v35  ;;  %v193_v56 = vmul.f32 %v960_v22, %v192_v51  ;;  %v196_v57 = vstv %s980_s7  ;;  %s1046_s29 = sld [smem:[#allocation4 + $0x1]]  ;;  %v79_v3 = vadd.f32 %v78_v43, %v73_v58 }
  0x1f   :  { %531 = vmatpush.bf16.msra.mxu3 %v799_v36  ;;  %v190_v60 = vadd.f32 %v189_v50, %v186_v44  ;;  %v197_v61 = vmul.f32 %v965_v23, %v196_v57  ;;  %v200_v62 = vstv %s995_s19  ;;  %s1055_s15 = sld [smem:[#allocation2 + $0x100]] }
  0x20   :  { %v204_v0 = vstv %s1003_s21  ;;  %s1059_s2 = sld [smem:[#allocation2 + $0x101]]  ;;  %172 = vmatpush.bf16.msra.mxu0 %v774_v42  ;;  %v201_v5 = vmul.f32 %v977_v27, %v200_v62  ;;  %v85_v10 = vadd.f32 %v84_v54, %v79_v3 }
  0x21   :  { %294 = vmatpush.bf16.msra.mxu1 %v782_v46  ;;  %v194_v4 = vadd.f32 %v193_v56, %v190_v60  ;;  %v208_v6 = vstv %s1013_s23  ;;  %s1069_s19 = sld [smem:[#allocation2 + $0x102]]  ;;  %v205_v12 = vmul.f32 %v992_v33, %v204_v0 }
  0x22   :  { %413 = vmatpush.bf16.msra.mxu2 %v790_v52  ;;  %s1078_s24 = sld [smem:[#allocation2 + $0x103]]  ;;  %v212_v13 = vstv %s1021_s28  ;;  %v209_v14 = vmul.f32 %v1009_v39, %v208_v6  ;;  %v91_v17 = vadd.f32 %v90_v63, %v85_v10 }
  0x23   :  { %532 = vmatpush.bf16.msra.mxu3 %v798_v53  ;;  %v198_v11 = vadd.f32 %v197_v61, %v194_v4  ;;  %s1082_s23 = sld [smem:[#allocation2 + $0x104]]  ;;  %v216_v20 = vstv %s1034_s27  ;;  %v213_v29 = vmul.f32 %v1029_v48, %v212_v13 }
  0x24   :  { %s1085_s26 = sld [smem:[#allocation2 + $0x105]]  ;;  %173 = vmatpush.bf16.msra.mxu0 %v773_v1  ;;  %v97_v32 = vadd.f32 %v96_v9, %v91_v17  ;;  %v217_v37 = vmul.f32 %v1051_v59, %v216_v20  ;;  %v220_v52 = vstv %s1046_s29 }
  0x25   :  { %295 = vmatpush.bf16.msra.mxu1 %v781_v2  ;;  %v202_v18 = vadd.f32 %v201_v5, %v198_v11  ;;  %v304_v24 = vstv %s1055_s15  ;;  %s1095_s28 = sld [smem:[#allocation2 + $0x106]] }
  0x26   :  { %414 = vmatpush.bf16.msra.mxu2 %v789_v7  ;;  %v305_v30 = vmul.f32 %v304_v24, %v947_v19  ;;  %v307_v31 = vstv %s1059_s2  ;;  %s1107_s27 = sld [smem:[#allocation2 + $0x107]]  ;;  %v100_v41 = vadd.f32 %v99_v28, %v97_v32 }
  0x27   :  { %533 = vmatpush.bf16.msra.mxu3 %v797_v8  ;;  %v206_v34 = vadd.f32 %v205_v12, %v202_v18  ;;  %v308_v35 = vmul.f32 %v955_v21, %v307_v31  ;;  %v311_v36 = vstv %s1069_s19  ;;  %s1111_s1 = sld [smem:[#allocation2 + $0x108]] }
  0x28   :  { %v312_v38 = vmul.f32 %v960_v22, %v311_v36  ;;  %v315_v40 = vstv %s1078_s24  ;;  %s1116_s3 = sld [smem:[#allocation4 + $0x2]]  ;;  %174 = vmatpush.bf16.msra.mxu0 %v772_v15  ;;  %v101_v47 = vmax.f32 %v100_v41, 0.0 }
  0x29   :  { %296 = vmatpush.bf16.msra.mxu1 %v780_v16  ;;  %v210_v42 = vadd.f32 %v209_v14, %v206_v34  ;;  %v309_v43 = vadd.f32 %v308_v35, %v305_v30  ;;  %v319_v44 = vstv %s1082_s23  ;;  %s714_s11 = sld [smem:[#allocation2 + $0x180]]  ;;  %v316_v45 = vmul.f32 %v965_v23, %v315_v40 }
  0x2a   :  { %415 = vmatpush.bf16.msra.mxu2 %v788_v25  ;;  %v323_v46 = vstv %s1085_s26  ;;  %s715_s30 = sld [smem:[#allocation2 + $0x181]]  ;;  %v320_v51 = vmul.f32 %v977_v27, %v319_v44  ;;  %v102_v55 = vpack.c.bf16 %v101_v47, %v101_v47 }
  0x2b   :  { %534 = vmatpush.bf16.msra.mxu3 %v796_v26  ;;  %v214_v49 = vadd.f32 %v213_v29, %v210_v42  ;;  %v313_v50 = vadd.f32 %v312_v38, %v309_v43  ;;  %s716_s15 = sld [smem:[#allocation2 + $0x182]]  ;;  %v324_v53 = vmul.f32 %v992_v33, %v323_v46  ;;  %v327_v54 = vstv %s1095_s28 }
  0x2c   :  { %s717_s2 = sld [smem:[#allocation2 + $0x183]]  ;;  %v331_v58 = vstv %s1107_s27  ;;  %v328_v60 = vmul.f32 %v1009_v39, %v327_v54  ;;  %175 = vmatmul.bf16.vlgmr.msra.gmra.mxu0 %v102_v55 }
  0x2d   :  { %v218_v56 = vadd.f32 %v217_v37, %v214_v49  ;;  %v317_v57 = vadd.f32 %v316_v45, %v313_v50  ;;  %s718_s7 = sld [smem:[#allocation2 + $0x184]]  ;;  %v335_v63 = vstv %s1111_s1  ;;  %v332_v1 = vmul.f32 %v1029_v48, %v331_v58 }
  0x2e   :  { %s1127_s16 = sld [smem:[#allocation2 + $0x185]]  ;;  %v336_v8 = vmul.f32 %v1051_v59, %v335_v63  ;;  %v339_v18 = vstv %s1116_s3 }
  0x2f   :  { %v221_v61 = vadd.f32 %v220_v52, %v218_v56  ;;  %v321_v62 = vadd.f32 %v320_v51, %v317_v57  ;;  %v423_v0 = vstv %s714_s11  ;;  %s1130_s17 = sld [smem:[#allocation2 + $0x186]] }
  0x30   :  { %v424_v2 = vmul.f32 %v423_v0, %v947_v19  ;;  %v426_v3 = vstv %s715_s30  ;;  %s1134_s29 = sld [smem:[#allocation2 + $0x187]] }
  0x31   :  { %v222_v4 = vmax.f32 %v221_v61, 0.0  ;;  %v325_v5 = vadd.f32 %v324_v53, %v321_v62  ;;  %v427_v6 = vmul.f32 %v955_v21, %v426_v3  ;;  %v430_v7 = vstv %s716_s15  ;;  %s722_s0 = sld [smem:[#allocation2 + $0x188]] }
  0x32   :  { %v431_v9 = vmul.f32 %v960_v22, %v430_v7  ;;  %v434_v10 = vstv %s717_s2  ;;  %s723_s19 = sld [smem:[#allocation4 + $0x3]] }
  0x33   :  { %v223_v11 = vpack.c.bf16 %v222_v4, %v222_v4  ;;  %v329_v19 = vadd.f32 %v328_v60, %v325_v5  ;;  %v428_v12 = vadd.f32 %v427_v6, %v424_v2  ;;  %v435_v13 = vmul.f32 %v965_v23, %v434_v10 }
  0x34   :  { %v438_v14 = vstv %s718_s7  ;;  %v442_v15 = vstv %s1127_s16 }
  0x35   :  { %297 = vmatmul.bf16.vlgmr.msra.gmra.mxu1 %v223_v11  ;;  %v333_v16 = vadd.f32 %v332_v1, %v329_v19  ;;  %v432_v21 = vadd.f32 %v431_v9, %v428_v12  ;;  %v439_v17 = vmul.f32 %v977_v27, %v438_v14  ;;  %v446_v20 = vstv %s1130_s17 }
  0x36   :  { %v443_v22 = vmul.f32 %v992_v33, %v442_v15  ;;  %v450_v26 = vstv %s1134_s29  ;;  %v447_v30 = vmul.f32 %v1009_v39, %v446_v20 }
  0x37   :  { %v337_v24 = vadd.f32 %v336_v8, %v333_v16  ;;  %v436_v25 = vadd.f32 %v435_v13, %v432_v21  ;;  %v454_v23 = vstv %s722_s0  ;;  %v451_v34 = vmul.f32 %v1029_v48, %v450_v26  ;;  %v806_v48 = vld [vmem:[%s1159_s4] ss:$0 sm:$0xff] }
  0x38   :  { %v455_v27 = vmul.f32 %v1051_v59, %v454_v23  ;;  %v458_v38 = vstv %s723_s19 }
  0x39   :  { %v340_v28 = vadd.f32 %v339_v18, %v337_v24  ;;  %v440_v29 = vadd.f32 %v439_v17, %v436_v25 }
  0x3b   :  { %v341_v31 = vmax.f32 %v340_v28, 0.0  ;;  %v444_v32 = vadd.f32 %v443_v22, %v440_v29 }
  0x3d   :  { %v342_v35 = vpack.c.bf16 %v341_v31, %v341_v31  ;;  %v448_v36 = vadd.f32 %v447_v30, %v444_v32 }
  0x3f   :  { %416 = vmatmul.bf16.vlgmr.msra.gmra.mxu2 %v342_v35  ;;  %v452_v37 = vadd.f32 %v451_v34, %v448_v36 }
  0x41   :  { %v456_v40 = vadd.f32 %v455_v27, %v452_v37 }
  0x43   :  { %v459_v33 = vadd.f32 %v458_v38, %v456_v40 }
  0x45   :  { %v460_v41 = vmax.f32 %v459_v33, 0.0 }
  0x47   :  { %v461_v42 = vpack.c.bf16 %v460_v41, %v460_v41 }
  0x49   :  { %535 = vmatmul.bf16.vlgmr.msra.gmra.mxu3 %v461_v42 }
  0xa9   :  { %v176_v43 = vpop.f32.mrf.mxu0 }
  0xaa   :  { %v183_v46 = vadd.f32 %v806_v48, %v176_v43 }
  0xb1   :  { %v178_v39 = vpop.f32.mrf.mxu0 }
  0xb2   :  { %v298_v44 = vpop.f32.mrf.mxu1 }
  0xb3   :  { %v302_v49 = vadd.f32 %v298_v44, %v183_v46 }
  0xba   :  { %v300_v45 = vpop.f32.mrf.mxu1 }
  0xc2   :  { %v417_v47 = vpop.f32.mrf.mxu2 }
  0xc3   :  { %v421_v59 = vadd.f32 %v417_v47, %v302_v49 }
  0xca   :  { %v419_v50 = vpop.f32.mrf.mxu2 }
  0xcc   :  { %v536_v51 = vpop.f32.mrf.mxu3 }
  0xcd   :  { %v540_v52 = vadd.f32 %v536_v51, %v421_v59 }
  0xcf   :  { %v541_v53 = vmax.f32 %v540_v52, 0.0 }
  0xd1   :  { %v542_v54 = vpack.c.bf16 %v541_v53, %v541_v53 }
  0xd3   :  { %543 = vst [vmem:[%s1160_s5] sm:$0xf] %v542_v54 }
  0xd4   :  { %v538_v55 = vpop.f32.mrf.mxu3 }
  0xd5   :  { %548 = vsyncpa [#allocation3], 1 }
  0xd6   :  { %549 = vsyncpa [#allocation5], 1 }

</bundles_post_ra>
